<compile_context>
chip_gen: v5e
topology: v5e:2x2
jax: 0.10.0
libtpu: 0.0.40
codegen_flags: <defaults>
</compile_context>

<pallas_src>
import jax
import jax.numpy as jnp
import numpy as np
from jax.experimental import pallas as pl
from jax.experimental.pallas import tpu as pltpu


def _resnet_block2_kernel(x_ref, w0_ref, b0_ref, w1_ref, b1_ref, o_ref):
    """One batch tile of the whole block.

    x_ref  : (TB, Din)   f32   input tile (also the residual)
    w0_ref : (Din, H0)   bf16  fc0 weight (transposed)
    b0_ref : (1, H0)     f32
    w1_ref : (H0, Dout)  bf16  fc1 weight (transposed; zero cols if H1 < Dout)
    b1_ref : (1, Dout)   f32   (all constant-1 padding already folded in)
    o_ref  : (TB, Dout)  f32/bf16
    """
    x = x_ref[...]                                   # f32 residual path

    # fc0 + ReLU : bf16 operands on the MXU, f32 accumulation / elementwise.
    h = jnp.dot(x.astype(jnp.bfloat16), w0_ref[...],
                preferred_element_type=jnp.float32)
    h = jnp.maximum(h + b0_ref[...], 0.0)

    # fc1 (constant-1 pads are folded into W1/b1 by the wrapper).
    y = jnp.dot(h.astype(jnp.bfloat16), w1_ref[...],
                preferred_element_type=jnp.float32)
    y = y + b1_ref[...]                              # (TB, Dout)

    din = x_ref.shape[-1]
    dout = o_ref.shape[-1]
    if din < dout:
        # Residual's constant-1 tail already lives in b1; only zero-extend x.
        # Both widths sit inside one 128-lane vreg, so this lowers to a single
        # iota-masked select (no cross-lane data movement, no extra HBM bytes).
        x = jnp.pad(x, ((0, 0), (0, dout - din)))

    o_ref[...] = jnp.maximum(y + x, 0.0).astype(o_ref.dtype)


def _round_up(x, m):
    return ((x + m - 1) // m) * m


def resnet_block2(x, w0, b0, w1, b1, *, block_b=4096, out_dtype=None):
    """x: (B, Din) f32.  w0: (Din, H0), b0: (H0,), w1: (H0, H1), b1: (H1,)."""
    B, din = x.shape
    h0 = w0.shape[1]
    h1 = w1.shape[1]
    dout = max(din, h1)
    out_dtype = x.dtype if out_dtype is None else out_dtype

    # --- one-time parameter prep (outside the hot loop) ---------------------
    if h1 < dout:
        # input_dim > feature_dim: fold "pad y with constant 1" into W1/b1.
        w1_eff = jnp.concatenate(
            [w1, jnp.zeros((h0, dout - h1), dtype=w1.dtype)], axis=-1)
        b1_eff = jnp.concatenate(
            [b1, jnp.ones((dout - h1,), dtype=b1.dtype)], axis=-1)
    elif din < dout:
        # input_dim < feature_dim: residual is x padded with 1.0; fold that
        # constant-1 tail into b1 so the kernel only zero-extends the residual.
        w1_eff = w1
        b1_eff = b1 + (jnp.arange(dout) >= din).astype(b1.dtype)
    else:
        w1_eff, b1_eff = w1, b1

    w0_bf = w0.astype(jnp.bfloat16)
    w1_bf = w1_eff.astype(jnp.bfloat16)
    b0_2d = b0.reshape(1, h0).astype(jnp.float32)
    b1_2d = b1_eff.reshape(1, dout).astype(jnp.float32)

    # --- batch tile selection ------------------------------------------------
    # Big tiles to amortize the ~0.35 us per-step overhead, but always aim for
    # >= 2 grid steps so both TensorCores are used on v7x (megacore sharding of
    # the "parallel" axis).  tb stays a multiple of 8 sublanes unless B itself
    # is tiny (full-extent block is always legal).
    if B <= 8:
        tb = B
    else:
        tb = min(block_b, _round_up(pl.cdiv(B, 2), 8))
    grid = (pl.cdiv(B, tb),)

    # Raise the scoped-VMEM limit only if the double-buffered working set would
    # overshoot the conservative default (16 MiB on v5e) — e.g. very large tb.
    out_itemsize = jnp.dtype(out_dtype).itemsize
    vmem_est = (2 * tb * din * 4 + 2 * tb * dout * out_itemsize
                + 2 * (din * h0 + h0 * dout) + 4 * (h0 + dout))
    cp_kwargs = {}
    if vmem_est > 12 * 1024 * 1024:
        cp_kwargs["vmem_limit_bytes"] = int(2 * vmem_est) + (4 << 20)

    return pl.pallas_call(
        _resnet_block2_kernel,
        out_shape=jax.ShapeDtypeStruct((B, dout), out_dtype),
        grid=grid,
        in_specs=[
            pl.BlockSpec((tb, din), lambda i: (i, 0)),
            pl.BlockSpec((din, h0), lambda i: (0, 0)),
            pl.BlockSpec((1, h0), lambda i: (0, 0)),
            pl.BlockSpec((h0, dout), lambda i: (0, 0)),
            pl.BlockSpec((1, dout), lambda i: (0, 0)),
        ],
        out_specs=pl.BlockSpec((tb, dout), lambda i: (i, 0)),
        compiler_params=pltpu.CompilerParams(
            dimension_semantics=("parallel",), **cp_kwargs),
    )(x, w0_bf, b0_2d, w1_bf, b1_2d)


def _reference(x, w0, b0, w1, b1):
    """Pure-JAX reference mirroring the kernel's bf16-operand / f32-accum dots."""
    h = jnp.dot(x.astype(jnp.bfloat16), w0.astype(jnp.bfloat16),
                preferred_element_type=jnp.float32) + b0
    h = jnp.maximum(h, 0.0)
    y = jnp.dot(h.astype(jnp.bfloat16), w1.astype(jnp.bfloat16),
                preferred_element_type=jnp.float32) + b1
    din, dft = x.shape[1], y.shape[1]
    if din > dft:
        y = jnp.pad(y, ((0, 0), (0, din - dft)), constant_values=1.0)
    elif din < dft:
        x = jnp.pad(x, ((0, 0), (0, dft - din)), constant_values=1.0)
    return jnp.maximum(y + x, 0.0)


def _make_params(key, input_dim, hidden_dims):
    k0w, k0b, k1w, k1b = jax.random.split(key, 4)
    bnd0 = 1.0 / np.sqrt(input_dim)
    w0 = jax.random.uniform(k0w, (input_dim, hidden_dims[0]),
                            minval=-bnd0, maxval=bnd0, dtype=jnp.float32)
    b0 = jax.random.uniform(k0b, (hidden_dims[0],),
                            minval=-bnd0, maxval=bnd0, dtype=jnp.float32)
    bnd1 = 1.0 / np.sqrt(hidden_dims[0])
    w1 = jax.random.uniform(k1w, (hidden_dims[0], hidden_dims[1]),
                            minval=-bnd1, maxval=bnd1, dtype=jnp.float32)
    b1 = jax.random.uniform(k1b, (hidden_dims[1],),
                            minval=-bnd1, maxval=bnd1, dtype=jnp.float32)
    return w0, b0, w1, b1


if __name__ == "__main__":
    B = 64
    key = jax.random.PRNGKey(0)
    kx, kp1, kp2, kp3 = jax.random.split(key, 4)

    # Exercise all three pad cases of the module:
    #   input_dim < feature_dim, input_dim > feature_dim, input_dim == feature_dim
    configs = [
        (32, [64, 48]),   # pad input with 1   (folded into b1 + zero-extend)
        (32, [64, 16]),   # pad fc1 output w 1 (folded into W1/b1)
        (32, [64, 32]),   # no padding
    ]
    for (input_dim, hidden_dims), kp in zip(configs, (kp1, kp2, kp3)):
        x = jax.random.normal(kx, (B, input_dim), dtype=jnp.float32)
        w0, b0, w1, b1 = _make_params(kp, input_dim, hidden_dims)

        out = resnet_block2(x, w0, b0, w1, b1)
        out = jax.block_until_ready(out)

        ref = _reference(x, w0, b0, w1, b1)
        np.testing.assert_allclose(np.asarray(out), np.asarray(ref),
                                   rtol=1e-3, atol=1e-3)

    # Optional reduced-precision output path (cuts store-side HBM bytes).
    x = jax.random.normal(kx, (B, 32), dtype=jnp.float32)
    w0, b0, w1, b1 = _make_params(kp1, 32, [64, 48])
    out_bf16 = jax.block_until_ready(
        resnet_block2(x, w0, b0, w1, b1, out_dtype=jnp.bfloat16))
    ref = _reference(x, w0, b0, w1, b1)
    np.testing.assert_allclose(np.asarray(out_bf16, dtype=np.float32),
                               np.asarray(ref), rtol=2e-2, atol=2e-2)

    print("KERNEL_OK")
</pallas_src>

<mosaic_0001>
module attributes {stable_mosaic.version = 11 : i64} {
  func.func @_resnet_block2_kernel(%arg0: i32, %arg1: memref<32x32xf32, #tpu.memory_space<vmem>>, %arg2: memref<32x64xbf16, #tpu.memory_space<vmem>>, %arg3: memref<1x64xf32, #tpu.memory_space<vmem>>, %arg4: memref<64x48xbf16, #tpu.memory_space<vmem>>, %arg5: memref<1x48xf32, #tpu.memory_space<vmem>>, %arg6: memref<32x48xf32, #tpu.memory_space<vmem>>) attributes {dimension_semantics = [#tpu.dimension_semantics<parallel>], iteration_bounds = array<i64: 2>, scalar_prefetch = 0 : i64, scratch_operands = 0 : i64, tpu.core_type = #tpu.core_type<tc>, window_params = [{transform_indices = @transform_0, window_bounds = array<i64: 32, 32>}, {pipeline_mode = #tpu.pipeline_mode<synchronous>, transform_indices = @transform_1, window_bounds = array<i64: 32, 64>}, {pipeline_mode = #tpu.pipeline_mode<synchronous>, transform_indices = @transform_2, window_bounds = array<i64: 1, 64>}, {pipeline_mode = #tpu.pipeline_mode<synchronous>, transform_indices = @transform_3, window_bounds = array<i64: 64, 48>}, {pipeline_mode = #tpu.pipeline_mode<synchronous>, transform_indices = @transform_4, window_bounds = array<i64: 1, 48>}, {transform_indices = @transform_5, window_bounds = array<i64: 32, 48>}]} {
    %c0 = arith.constant 0 : index
    %c0_0 = arith.constant 0 : index
    %0 = vector.load %arg1[%c0, %c0_0] : memref<32x32xf32, #tpu.memory_space<vmem>>, vector<32x32xf32>
    %1 = arith.truncf %0 : vector<32x32xf32> to vector<32x32xbf16>
    %c0_1 = arith.constant 0 : index
    %c0_2 = arith.constant 0 : index
    %2 = vector.load %arg2[%c0_1, %c0_2] : memref<32x64xbf16, #tpu.memory_space<vmem>>, vector<32x64xbf16>
    %cst = arith.constant dense<0.000000e+00> : vector<32x64xf32>
    %3 = tpu.matmul %1, %2, %cst {dimension_numbers = #tpu.dot_dimension_numbers<[1], [0], [0], [1], [0, 0, 1, 1], [], []>} : vector<32x32xbf16>, vector<32x64xbf16>, vector<32x64xf32> -> vector<32x64xf32>
    %c0_3 = arith.constant 0 : index
    %c0_4 = arith.constant 0 : index
    %4 = vector.load %arg3[%c0_3, %c0_4] : memref<1x64xf32, #tpu.memory_space<vmem>>, vector<1x64xf32>
    %5 = vector.broadcast %4 : vector<1x64xf32> to vector<32x64xf32>
    %6 = arith.addf %3, %5 : vector<32x64xf32>
    %cst_5 = arith.constant 0.000000e+00 : f32
    %7 = vector.broadcast %cst_5 : f32 to vector<32x64xf32>
    %8 = arith.maximumf %6, %7 : vector<32x64xf32>
    %9 = arith.truncf %8 : vector<32x64xf32> to vector<32x64xbf16>
    %c0_6 = arith.constant 0 : index
    %c0_7 = arith.constant 0 : index
    %10 = vector.load %arg4[%c0_6, %c0_7] : memref<64x48xbf16, #tpu.memory_space<vmem>>, vector<64x48xbf16>
    %cst_8 = arith.constant dense<0.000000e+00> : vector<32x48xf32>
    %11 = tpu.matmul %9, %10, %cst_8 {dimension_numbers = #tpu.dot_dimension_numbers<[1], [0], [0], [1], [0, 0, 1, 1], [], []>} : vector<32x64xbf16>, vector<64x48xbf16>, vector<32x48xf32> -> vector<32x48xf32>
    %c0_9 = arith.constant 0 : index
    %c0_10 = arith.constant 0 : index
    %12 = vector.load %arg5[%c0_9, %c0_10] : memref<1x48xf32, #tpu.memory_space<vmem>>, vector<1x48xf32>
    %13 = vector.broadcast %12 : vector<1x48xf32> to vector<32x48xf32>
    %14 = arith.addf %11, %13 : vector<32x48xf32>
    %c0_i32 = arith.constant 0 : i32
    %15 = arith.sitofp %c0_i32 : i32 to f32
    %16 = vector.broadcast %15 : f32 to vector<32x16xf32>
    %17 = tpu.concatenate %0, %16 in 1 : vector<32x32xf32>, vector<32x16xf32> -> vector<32x48xf32>
    %18 = arith.addf %14, %17 : vector<32x48xf32>
    %cst_11 = arith.constant 0.000000e+00 : f32
    %19 = vector.broadcast %cst_11 : f32 to vector<32x48xf32>
    %20 = arith.maximumf %18, %19 : vector<32x48xf32>
    %c0_12 = arith.constant 0 : index
    %c0_13 = arith.constant 0 : index
    %21 = vector.load %arg6[%c0_12, %c0_13] : memref<32x48xf32, #tpu.memory_space<vmem>>, vector<32x48xf32>
    tpu.vector_store %arg6[%c0_12, %c0_13], %20 {strides = array<i32>} : memref<32x48xf32, #tpu.memory_space<vmem>>, vector<32x48xf32>,
    return
  }
  func.func @transform_0(%arg0: i32) -> (i32, i32) {
    %c0_i32 = arith.constant 0 : i32
    %c0_i32_0 = arith.constant 0 : i32
    return %arg0, %c0_i32 : i32, i32
  }
  func.func @transform_1(%arg0: i32) -> (i32, i32) {
    %c0_i32 = arith.constant 0 : i32
    %c0_i32_0 = arith.constant 0 : i32
    %c0_i32_1 = arith.constant 0 : i32
    return %c0_i32, %c0_i32_0 : i32, i32
  }
  func.func @transform_2(%arg0: i32) -> (i32, i32) {
    %c0_i32 = arith.constant 0 : i32
    %c0_i32_0 = arith.constant 0 : i32
    %c0_i32_1 = arith.constant 0 : i32
    return %c0_i32, %c0_i32_0 : i32, i32
  }
  func.func @transform_3(%arg0: i32) -> (i32, i32) {
    %c0_i32 = arith.constant 0 : i32
    %c0_i32_0 = arith.constant 0 : i32
    %c0_i32_1 = arith.constant 0 : i32
    return %c0_i32, %c0_i32_0 : i32, i32
  }
  func.func @transform_4(%arg0: i32) -> (i32, i32) {
    %c0_i32 = arith.constant 0 : i32
    %c0_i32_0 = arith.constant 0 : i32
    %c0_i32_1 = arith.constant 0 : i32
    return %c0_i32, %c0_i32_0 : i32, i32
  }
  func.func @transform_5(%arg0: i32) -> (i32, i32) {
    %c0_i32 = arith.constant 0 : i32
    %c0_i32_0 = arith.constant 0 : i32
    return %arg0, %c0_i32 : i32, i32
  }
}

</mosaic_0001>

<bundles_post_ra>
// kernel: tpu_custom_call.1
= control target key start
LH: loop header
LB: loop body
LE: loop exit
PB: predicated region body
PF: predicated region fallthrough
CT: control target
= control target key end

     0   :  { %s521_s18 = smov 0   ;;  %s579_s0 = inlined_call_operand.vmem [shape: f32[64,32], index: 0, kind: input, shape index: {}]   ;;  %s580_s1 = inlined_call_operand.vmem [shape: bf16[32,64], index: 1, kind: input, shape index: {}]   ;;  %s581_s2 = inlined_call_operand.vmem [shape: f32[1,64], index: 2, kind: input, shape index: {}]   ;;  %s582_s3 = inlined_call_operand.vmem [shape: bf16[64,48], index: 3, kind: input, shape index: {}]   ;;  %s583_s4 = inlined_call_operand.vmem [shape: f32[1,48], index: 4, kind: input, shape index: {}]   ;;  %s584_s5 = inlined_call_operand.vmem [shape: f32[64,48], index: 5, kind: output, shape index: {}]  }
   0x1 LB: > { %s422_s19 = sadd.s32 4294967295, %s489_s18   ;;  %p426_p0 = scmp.ge.s32.totalorder %s489_s18, 1  ;;  %s489_s18 = sphi %s521_s18, %s15_s18  }
   0x2   : > { %p188_p1 = scmp.lt.s32.totalorder %s489_s18, 3 }
   0x4   : > { %p189_p2 = pnand %p426_p0, %p188_p1 }
   0x5   : > { %s427_s22 = sshll.u32 (!%p189_p2), %s422_s19, 2 }
   0x6   : > { %192 = sbr.rel (%p189_p2) target bundleno = 312 (0x138), region = 40  ;;  %p217_p3 = scmp.lt.s32.totalorder (!%p189_p2), %s427_s22, 7 }
   0xb   : > { %v462_v0 = vld [vmem:[%s580_s1 + $0x8] sm:$0xff]  ;;  %v461_v1 = vld [vmem:[%s580_s1] sm:$0xff]  ;;  %s586_s22 = smov (!%p217_p3, %s427_s22), 7  ;;  %vm255_vm0 = vcmask 261120   ;;  %v466_v8 = vld [vmem:[%s582_s3 + $0x18] sm:$0xff]  ;;  %vm323_vm1 = vcmask 523264  }
   0xc   : > { %268 = vmatpush.bf16.msra.mxu0 %v462_v0  ;;  %467 = vmatpush.bf16.msra.mxu3 %v462_v0  ;;  %s428_s25 = sshll.u32 %s586_s22, 3  ;;  %v465_v9 = vld [vmem:[%s582_s3 + $0x10] sm:$0xff]  ;;  %v464_v10 = vld [vmem:[%s582_s3 + $0x8] sm:$0xff]  ;;  %v463_v11 = vld [vmem:[%s582_s3] sm:$0xff]  ;;  %vm361_vm2 = vcmask 392192  }
   0xd   : > { %s220_s28 = scalar_lea.vmem %s579_s0, %s428_s25  ;;  %334 = vmatpush.bf16.msra.mxu1 %v466_v8  ;;  %469 = vmatpush.bf16.msra.mxu2 %v466_v8  ;;  %v481_v13 = vld [vmem:[%s581_s2] ss:$0 sm:$0xff]  ;;  %s226_s19 = scalar_lea.vmem %s584_s5, %s428_s25 }
   0xe   : > { %v229_v2 = vld [vmem:[%s220_s28] sm:$0xff]  ;;  %v230_v3 = vld [vmem:[%s220_s28 + $0x8] sm:$0xff]  ;;  %v231_v4 = vld [vmem:[%s220_s28 + $0x10] sm:$0xff] }
   0xf   : > { %v233_v5 = vpack.c.bf16 %v230_v3, %v229_v2  ;;  %v232_v6 = vld [vmem:[%s220_s28 + $0x18] sm:$0xff]  ;;  %v482_v27 = vld [vmem:[%s583_s4] ss:$0 sm:$0xff]  ;;  %v349_v29 = vsel %vm255_vm0, %v229_v2, 0.0  ;;  %v350_v34 = vsel %vm255_vm0, %v230_v3, 0.0  ;;  %v351_v39 = vsel %vm255_vm0, %v231_v4, 0.0 }
  0x10   : > { %269 = vmatpush.bf16.msra.mxu0 %v461_v1  ;;  %468 = vmatpush.bf16.msra.mxu3 %v461_v1  ;;  %v234_v7 = vpack.c.bf16 %v232_v6, %v231_v4  ;;  %v352_v44 = vsel %vm255_vm0, %v232_v6, 0.0 }
  0x11   : > { %335 = vmatpush.bf16.msra.mxu1 %v465_v9  ;;  %470 = vmatpush.bf16.msra.mxu2 %v465_v9 }
  0x13   : > { %439 = vmatmul.msk.bf16.vlgmr.msra.gmra.mxu0 %vm255_vm0, %v233_v5  ;;  %440 = vmatmul.msk.bf16.vlgmr.msra.gmra.mxu3 %vm255_vm0, %v234_v7 }
  0x15   : > { %336 = vmatpush.bf16.msra.mxu1 %v464_v10  ;;  %471 = vmatpush.bf16.msra.mxu2 %v464_v10 }
  0x19   : > { %337 = vmatpush.bf16.msra.mxu1 %v463_v11  ;;  %472 = vmatpush.bf16.msra.mxu2 %v463_v11 }
  0x90   : > { %v271_v12 = vpop.f32.mrf.mxu0 }
  0x91   : > { %v272_v14 = vadd.f32 %v481_v13, %v271_v12 }
  0x93   : > { %v281_v17 = vmax.f32 %v272_v14, 0.0 }
  0x96   : > { %v276_v15 = vpop.f32.mrf.mxu3 }
  0x97   : > { %v277_v21 = vadd.f32 %v481_v13, %v276_v15 }
  0x98   : > { %v273_v16 = vpop.f32.mrf.mxu0 }
  0x99   : > { %v274_v18 = vadd.f32 %v481_v13, %v273_v16  ;;  %v283_v24 = vmax.f32 %v277_v21, 0.0 }
  0x9b   : > { %v282_v19 = vmax.f32 %v274_v18, 0.0 }
  0x9d   : > { %v285_v20 = vpack.c.bf16 %v282_v19, %v281_v17 }
  0x9e   : > { %v278_v22 = vpop.f32.mrf.mxu3 }
  0x9f   : > { %457 = vmatmul.msk.bf16.vlgmr.msra.gmra.mxu1 %vm323_vm1, %v285_v20  ;;  %v279_v23 = vadd.f32 %v481_v13, %v278_v22 }
  0xa1   : > { %v284_v25 = vmax.f32 %v279_v23, 0.0 }
  0xa3   : > { %v286_v26 = vpack.c.bf16 %v284_v25, %v283_v24 }
  0xa5   : > { %458 = vmatmul.msk.bf16.vlgmr.msra.gmra.mxu2 %vm323_vm1, %v286_v26 }
 0x11c   : > { %v339_v28 = vpop.f32.mrf.mxu1 }
 0x11d   : > { %v340_v30 = vadd.f32 %v482_v27, %v339_v28 }
 0x11f   : > { %v353_v31 = vadd.f32 %v349_v29, %v340_v30 }
 0x121   : > { %v357_v32 = vmax.f32 %v353_v31, 0.0 }
 0x123   : > { %362 = vst.msk [vmem:[%s226_s19] sm:$0xff] %vm361_vm2, %v357_v32 }
 0x124   : > { %v341_v33 = vpop.f32.mrf.mxu1 }
 0x125   : > { %v342_v35 = vadd.f32 %v482_v27, %v341_v33 }
 0x127   : > { %v354_v36 = vadd.f32 %v350_v34, %v342_v35 }
 0x128   : > { %v344_v38 = vpop.f32.mrf.mxu2 }
 0x129   : > { %v358_v37 = vmax.f32 %v354_v36, 0.0  ;;  %v345_v40 = vadd.f32 %v482_v27, %v344_v38 }
 0x12b   : > { %363 = vst.msk [vmem:[%s226_s19 + $0x8] sm:$0xff] %vm361_vm2, %v358_v37  ;;  %v355_v41 = vadd.f32 %v351_v39, %v345_v40 }
 0x12d   : > { %v359_v42 = vmax.f32 %v355_v41, 0.0 }
 0x12f   : > { %364 = vst.msk [vmem:[%s226_s19 + $0x10] sm:$0xff] %vm361_vm2, %v359_v42 }
 0x130   : > { %v346_v43 = vpop.f32.mrf.mxu2 }
 0x131   : > { %v347_v45 = vadd.f32 %v482_v27, %v346_v43 }
 0x133   : > { %v356_v46 = vadd.f32 %v352_v44, %v347_v45 }
 0x135   : > { %v360_v47 = vmax.f32 %v356_v46, 0.0 }
 0x137   : > { %365 = vst.msk [vmem:[%s226_s19 + $0x18] sm:$0xff] %vm361_vm2, %v360_v47 }
 0x138 PF: > { %s15_s18 = sadd.s32 1, %s489_s18  }
 0x139   : > { %p12_p4 = scmp.ge.s32.totalorder %s15_s18, 4  }
 0x13b   :  { %14 = sbr.rel (!%p12_p4) target bundleno = 1 (0x1), region = 70 }

</bundles_post_ra>
